<compile_context>
chip_gen: v6e
topology: v6e:2x2x1
jax: 0.10.0
libtpu: 0.0.40
codegen_flags: <defaults>
</compile_context>

<pallas_src>
import functools

import numpy as np
import jax
import jax.numpy as jnp
from jax import lax
from jax.experimental import pallas as pl
from jax.experimental.pallas import tpu as pltpu

_MAX_TR = 8192          # hard cap on packed rows per grid tile
_TARGET_STEPS = 8       # aim for >= this many grid steps (megacore + pipeline)


def _round_up(x, m):
    return (x + m - 1) // m * m


def _vmem_budget_and_limit():
    """Scoped-VMEM request and the fraction of it budgeted for our tiles.

    v5e/v6e have 128 MiB physical VMEM per TensorCore, v7x has 64 MiB, while
    the default scoped limit is only 16/32/32 MiB -- so pass an explicit
    vmem_limit_bytes and budget double-buffered tiles + in-kernel temporaries
    against ~3/4 of it, leaving headroom for Mosaic internals."""
    try:
        cap = int(pltpu.get_tpu_info().vmem_capacity_bytes)
    except Exception:  # no hardware info available -> assume the smallest (v7x)
        cap = 64 * 1024 * 1024
    limit = min(cap // 2, 64 * 1024 * 1024)
    return (3 * limit) // 4, limit


def _choose_tile(rows, lanes, itemsize, median):
    """Packed rows per tile (multiple of 8).

    VMEM model (per review): per row we hold 3 inputs x 2 pipeline buffers at
    the *lane-padded* width plus ~8 live f32 (TR, L) temporaries; the median
    path additionally regenerates an (L, L) f32 triangular matrix each step."""
    lanes_pad = _round_up(lanes, 128)
    per_row = 3 * 2 * lanes_pad * itemsize + 8 * lanes_pad * 4
    fixed = 2 * 1024 * 1024
    if median:
        fixed += 3 * lanes_pad * lanes_pad * 4
    budget, limit = _vmem_budget_and_limit()
    tr_cap = max(8, min(_MAX_TR, max(0, budget - fixed) // per_row) // 8 * 8)
    # Always leave multiple grid steps when the row count allows it, so v7x's
    # second TensorCore gets sharded work and DMA/compute pipelining happens.
    tr = min(tr_cap, max(8, _round_up(pl.cdiv(rows, _TARGET_STEPS), 8)))
    return tr, limit


def _floor_div_seg(idx, S, P):
    """idx // S for idx in [0, P*S), built from P-1 compares.

    Avoids relying on vector integer division; the unrolled compare+add chain
    is a handful of VPU ops."""
    seg = jnp.zeros_like(idx)
    for m in range(1, P):
        seg = seg + (idx >= m * S).astype(idx.dtype)
    return seg


def _median_depth_kernel(w_ref, s_ref, e_ref, o_ref, *, S, P):
    """Median depth for P lane-packed rays per row.

    Block layout: (TR, L = P*S).  Each row carries P consecutive rays; each
    ray owns a contiguous lane segment of S samples."""
    L = S * P
    w = w_ref[...].astype(jnp.float32)
    steps = (s_ref[...].astype(jnp.float32) + e_ref[...].astype(jnp.float32)) * 0.5

    lane = lax.broadcasted_iota(jnp.int32, w.shape, 1)
    seg = _floor_div_seg(lane, S, P)      # which ray within the row
    pos = lane - seg * S                  # sample index within the ray

    # Block-diagonal upper-triangular {0,1} matrix for the segment-local
    # inclusive cumsum, generated in-kernel (no HBM fetch, no double-buffered
    # VMEM residency).  Cost: a few hundred VPU ops per grid step, amortized
    # over the whole tile.
    kk = lax.broadcasted_iota(jnp.int32, (L, L), 0)
    jj = lax.broadcasted_iota(jnp.int32, (L, L), 1)
    tri = ((_floor_div_seg(kk, S, P) == _floor_div_seg(jj, S, P)) & (kk <= jj))
    tri = tri.astype(jnp.float32)

    # Segment-local inclusive cumsum on the MXU.  With lane packing K = N = L
    # (128 at S = 32), which restores the utilization the review flagged at
    # K = N = 32.  Kept in f32: bf16-rounded cumulative weights can flip the
    # median index at the 0.5 crossing (the review's own correctness concern);
    # an exact hi/lo bf16 split is the drop-in if the MXU stream ever binds.
    cw = jnp.dot(w, tri, preferred_element_type=jnp.float32)

    # torch.searchsorted(cw, 0.5, side='left') as a crossing mask: select the
    # first sample whose inclusive cumsum reaches 0.5; if none does, fall back
    # to the last sample (torch clamps the returned index S to S-1).
    # cw - w is the exclusive cumsum, so no shift / count / one-hot is needed.
    crossing = (cw >= 0.5) & ((cw - w) < 0.5)
    no_cross = (pos == S - 1) & (cw < 0.5)
    picked = steps * (crossing | no_cross).astype(jnp.float32)

    # Exactly one non-zero lane per segment; extract it with P masked
    # full-width lane reductions (VPU/XLU, stays f32, keeps the MXU free).
    for p in range(P):
        x = jnp.where(seg == p, picked, 0.0) if P > 1 else picked
        o_ref[:, p:p + 1] = jnp.sum(x, axis=-1, keepdims=True)


def _expected_depth_kernel(w_ref, s_ref, e_ref, o_ref, mn_ref, mx_ref, *, S, P, R):
    eps = 1e-10
    w = w_ref[...].astype(jnp.float32)
    steps = (s_ref[...].astype(jnp.float32) + e_ref[...].astype(jnp.float32)) * 0.5
    ws = w * steps

    lane = lax.broadcasted_iota(jnp.int32, w.shape, 1)
    seg = _floor_div_seg(lane, S, P)

    # Per-segment weighted sums via masked full-lane reductions (no MXU, no
    # lane reshape/relayout, full f32 precision).
    for p in range(P):
        if P > 1:
            m = seg == p
            num = jnp.sum(jnp.where(m, ws, 0.0), axis=-1, keepdims=True)
            den = jnp.sum(jnp.where(m, w, 0.0), axis=-1, keepdims=True)
        else:
            num = jnp.sum(ws, axis=-1, keepdims=True)
            den = jnp.sum(w, axis=-1, keepdims=True)
        o_ref[:, p:p + 1] = num / (den + eps)

    # Per-ROW (not per-ray) partial min/max of the *valid* steps; the wrapper
    # reduces these `rows` values for the global clamp.  The validity mask
    # excludes (a) the <= P-1 zero-padded rays when R % P != 0 and (b) the
    # garbage rows Pallas reads for the ragged last grid block, so no wrapper
    # slicing is required before the cross-row reduction.
    row = lax.broadcasted_iota(jnp.int32, w.shape, 0) + pl.program_id(0) * w.shape[0]
    valid = row * P + seg < R
    mn_ref[...] = jnp.min(jnp.where(valid, steps, jnp.inf), axis=-1, keepdims=True)
    mx_ref[...] = jnp.max(jnp.where(valid, steps, -jnp.inf), axis=-1, keepdims=True)


def depth_renderer(weights, starts, ends, method="median"):
    """JAX/Pallas equivalent of DepthRenderer.forward (ray_indices=None path).

    weights, starts, ends: (*batch, num_samples, 1) float arrays.
    Returns (*batch, 1) float32.
    """
    assert weights.shape == starts.shape == ends.shape
    batch_shape = weights.shape[:-2]
    S = int(weights.shape[-2])
    R = int(np.prod(batch_shape)) if batch_shape else 1

    # Lane packing: with S < 128 a (rays, S) layout wastes 1 - S/128 of every
    # vreg, so pack P = 128 // S consecutive rays per row when S divides 128.
    P = 128 // S if (S <= 128 and 128 % S == 0) else 1
    L = P * S
    rows = pl.cdiv(R, P)
    Rp = rows * P

    def prep(x):
        x2 = x.reshape(R, S)
        if not jnp.issubdtype(x2.dtype, jnp.floating):
            x2 = x2.astype(jnp.float32)
        if Rp != R:
            # Only fires when R is not a multiple of P (<= P-1 rays of zero
            # fill).  The previous pad-to-tile copy is gone: the ragged last
            # *grid* block is handled by Pallas itself.
            # TODO(synk): a split prefix/tail call would avoid even this copy.
            x2 = jnp.pad(x2, ((0, Rp - R), (0, 0)))
        return x2.reshape(rows, L)          # contiguous -> layout-free reshape

    w2, s2, e2 = prep(weights), prep(starts), prep(ends)
    itemsize = max(w2.dtype.itemsize, s2.dtype.itemsize, e2.dtype.itemsize)

    TR, vmem_limit = _choose_tile(rows, L, itemsize, median=(method == "median"))
    grid = (pl.cdiv(rows, TR),)
    in_spec = pl.BlockSpec((TR, L), lambda i: (i, 0))
    out_spec = pl.BlockSpec((TR, P), lambda i: (i, 0))
    row_spec = pl.BlockSpec((TR, 1), lambda i: (i, 0))
    cparams = pltpu.CompilerParams(
        dimension_semantics=("parallel",),
        vmem_limit_bytes=vmem_limit,
    )
    in_bytes = 3 * Rp * S * itemsize

    if method == "median":
        cost = pl.CostEstimate(
            flops=2 * rows * L * L + 24 * rows * L,
            transcendentals=0,
            bytes_accessed=in_bytes + rows * P * 4,
        )
        kernel = functools.partial(_median_depth_kernel, S=S, P=P)
        out = pl.pallas_call(
            kernel,
            out_shape=jax.ShapeDtypeStruct((rows, P), jnp.float32),
            grid=grid,
            in_specs=[in_spec, in_spec, in_spec],
            out_specs=out_spec,
            compiler_params=cparams,
            cost_estimate=cost,
        )(w2, s2, e2)
        depth = out.reshape(-1)[:R]
    elif method == "expected":
        cost = pl.CostEstimate(
            flops=16 * rows * L,
            transcendentals=0,
            bytes_accessed=in_bytes + (rows * P + 2 * rows) * 4,
        )
        kernel = functools.partial(_expected_depth_kernel, S=S, P=P, R=R)
        out, mn, mx = pl.pallas_call(
            kernel,
            out_shape=(
                jax.ShapeDtypeStruct((rows, P), jnp.float32),
                jax.ShapeDtypeStruct((rows, 1), jnp.float32),
                jax.ShapeDtypeStruct((rows, 1), jnp.float32),
            ),
            grid=grid,
            in_specs=[in_spec, in_spec, in_spec],
            out_specs=(out_spec, row_spec, row_spec),
            compiler_params=cparams,
            cost_estimate=cost,
        )(w2, s2, e2)
        # Global clamp from per-row partial min/max (invalid lanes already
        # masked in-kernel), matching steps.min()/steps.max() in the module.
        depth = jnp.clip(out.reshape(-1)[:R], jnp.min(mn), jnp.max(mx))
    else:
        # TODO(synk): "robust" / "robust_weighted_median" need per-ray /
        # global sorts with no clean Pallas TPU equivalent here.
        raise NotImplementedError(method)

    return depth.reshape(*batch_shape, 1)


# ----- pure-JAX references for correctness checking -----
def _median_ref(weights, starts, ends):
    steps = (starts + ends) * 0.5
    cw = jnp.cumsum(weights[..., 0], axis=-1)
    idx = jnp.sum((cw < 0.5).astype(jnp.int32), axis=-1, keepdims=True)
    idx = jnp.clip(idx, 0, steps.shape[-2] - 1)
    return jnp.take_along_axis(steps[..., 0], idx, axis=-1)


def _expected_ref(weights, starts, ends):
    eps = 1e-10
    steps = (starts + ends) * 0.5
    d = jnp.sum(weights * steps, axis=-2) / (jnp.sum(weights, axis=-2) + eps)
    return jnp.clip(d, jnp.min(steps), jnp.max(steps))


def _make_inputs(key, batch, num_samples):
    k1, k2 = jax.random.split(key)
    deltas = jax.random.uniform(k1, (*batch, num_samples, 1),
                                minval=0.05, maxval=0.15, dtype=jnp.float32)
    ends = jnp.cumsum(deltas, axis=-2) + 1.0
    starts = ends - deltas
    raw = jax.random.uniform(k2, (*batch, num_samples, 1),
                             minval=0.0, maxval=1.0, dtype=jnp.float32)
    weights = raw / jnp.sum(raw, axis=-2, keepdims=True)
    return weights, starts, ends


if __name__ == "__main__":
    key = jax.random.PRNGKey(0)

    # primary check: 128 rays, 32 samples (R % P == 0 -> no pad at all)
    batch = (2, 64)
    num_samples = 32
    weights, starts, ends = _make_inputs(key, batch, num_samples)

    depth_median = depth_renderer(weights, starts, ends, method="median")
    depth_expected = depth_renderer(weights, starts, ends, method="expected")
    jax.block_until_ready((depth_median, depth_expected))

    assert depth_median.shape == (*batch, 1)
    assert depth_expected.shape == (*batch, 1)
    np.testing.assert_allclose(np.asarray(depth_median),
                               np.asarray(_median_ref(weights, starts, ends)),
                               rtol=1e-5, atol=1e-5)
    np.testing.assert_allclose(np.asarray(depth_expected),
                               np.asarray(_expected_ref(weights, starts, ends)),
                               rtol=1e-5, atol=1e-5)

    # ragged path: R = 35 rays -> packed rows = 9, ragged last grid block and
    # one zero-padded ray inside the last valid row.
    batch2 = (5, 7)
    w2, s2, e2 = _make_inputs(jax.random.PRNGKey(1), batch2, num_samples)
    dm2 = depth_renderer(w2, s2, e2, method="median")
    de2 = depth_renderer(w2, s2, e2, method="expected")
    jax.block_until_ready((dm2, de2))
    assert dm2.shape == (*batch2, 1)
    assert de2.shape == (*batch2, 1)
    np.testing.assert_allclose(np.asarray(dm2), np.asarray(_median_ref(w2, s2, e2)),
                               rtol=1e-5, atol=1e-5)
    np.testing.assert_allclose(np.asarray(de2), np.asarray(_expected_ref(w2, s2, e2)),
                               rtol=1e-5, atol=1e-5)

    print("KERNEL_OK")
</pallas_src>

<mosaic_0001>
module attributes {stable_mosaic.version = 11 : i64} {
  func.func @_median_depth_kernel(%arg0: i32, %arg1: memref<8x128xf32, #tpu.memory_space<vmem>>, %arg2: memref<8x128xf32, #tpu.memory_space<vmem>>, %arg3: memref<8x128xf32, #tpu.memory_space<vmem>>, %arg4: memref<8x4xf32, #tpu.memory_space<vmem>>) attributes {dimension_semantics = [#tpu.dimension_semantics<parallel>], iteration_bounds = array<i64: 4>, scalar_prefetch = 0 : i64, scratch_operands = 0 : i64, tpu.core_type = #tpu.core_type<tc>, window_params = [{transform_indices = @transform_0, window_bounds = array<i64: 8, 128>}, {transform_indices = @transform_1, window_bounds = array<i64: 8, 128>}, {transform_indices = @transform_2, window_bounds = array<i64: 8, 128>}, {transform_indices = @transform_3, window_bounds = array<i64: 8, 4>}]} {
    %c0 = arith.constant 0 : index
    %c0_0 = arith.constant 0 : index
    %0 = vector.load %arg1[%c0, %c0_0] : memref<8x128xf32, #tpu.memory_space<vmem>>, vector<8x128xf32>
    %c0_1 = arith.constant 0 : index
    %c0_2 = arith.constant 0 : index
    %1 = vector.load %arg2[%c0_1, %c0_2] : memref<8x128xf32, #tpu.memory_space<vmem>>, vector<8x128xf32>
    %c0_3 = arith.constant 0 : index
    %c0_4 = arith.constant 0 : index
    %2 = vector.load %arg3[%c0_3, %c0_4] : memref<8x128xf32, #tpu.memory_space<vmem>>, vector<8x128xf32>
    %3 = arith.addf %1, %2 : vector<8x128xf32>
    %cst = arith.constant 5.000000e-01 : f32
    %4 = vector.broadcast %cst : f32 to vector<8x128xf32>
    %5 = arith.mulf %3, %4 : vector<8x128xf32>
    %6 = tpu.iota {dimensions = array<i32: 1>} : vector<8x128xi32>
    %c0_i32 = arith.constant 0 : i32
    %7 = vector.broadcast %c0_i32 : i32 to vector<8x128xi32>
    %c32_i32 = arith.constant 32 : i32
    %8 = vector.broadcast %c32_i32 : i32 to vector<8x128xi32>
    %9 = arith.cmpi sge, %6, %8 : vector<8x128xi32>
    %10 = arith.extui %9 : vector<8x128xi1> to vector<8x128xi32>
    %11 = arith.addi %7, %10 : vector<8x128xi32>
    %c64_i32 = arith.constant 64 : i32
    %12 = vector.broadcast %c64_i32 : i32 to vector<8x128xi32>
    %13 = arith.cmpi sge, %6, %12 : vector<8x128xi32>
    %14 = arith.extui %13 : vector<8x128xi1> to vector<8x128xi32>
    %15 = arith.addi %11, %14 : vector<8x128xi32>
    %c96_i32 = arith.constant 96 : i32
    %16 = vector.broadcast %c96_i32 : i32 to vector<8x128xi32>
    %17 = arith.cmpi sge, %6, %16 : vector<8x128xi32>
    %18 = arith.extui %17 : vector<8x128xi1> to vector<8x128xi32>
    %19 = arith.addi %15, %18 : vector<8x128xi32>
    %c32_i32_5 = arith.constant 32 : i32
    %20 = vector.broadcast %c32_i32_5 : i32 to vector<8x128xi32>
    %21 = arith.muli %19, %20 : vector<8x128xi32>
    %22 = arith.subi %6, %21 : vector<8x128xi32>
    %23 = tpu.iota {dimensions = array<i32: 0>} : vector<128x128xi32>
    %24 = tpu.iota {dimensions = array<i32: 1>} : vector<128x128xi32>
    %c0_i32_6 = arith.constant 0 : i32
    %25 = vector.broadcast %c0_i32_6 : i32 to vector<128x128xi32>
    %c32_i32_7 = arith.constant 32 : i32
    %26 = vector.broadcast %c32_i32_7 : i32 to vector<128x128xi32>
    %27 = arith.cmpi sge, %23, %26 : vector<128x128xi32>
    %28 = arith.extui %27 : vector<128x128xi1> to vector<128x128xi32>
    %29 = arith.addi %25, %28 : vector<128x128xi32>
    %c64_i32_8 = arith.constant 64 : i32
    %30 = vector.broadcast %c64_i32_8 : i32 to vector<128x128xi32>
    %31 = arith.cmpi sge, %23, %30 : vector<128x128xi32>
    %32 = arith.extui %31 : vector<128x128xi1> to vector<128x128xi32>
    %33 = arith.addi %29, %32 : vector<128x128xi32>
    %c96_i32_9 = arith.constant 96 : i32
    %34 = vector.broadcast %c96_i32_9 : i32 to vector<128x128xi32>
    %35 = arith.cmpi sge, %23, %34 : vector<128x128xi32>
    %36 = arith.extui %35 : vector<128x128xi1> to vector<128x128xi32>
    %37 = arith.addi %33, %36 : vector<128x128xi32>
    %c0_i32_10 = arith.constant 0 : i32
    %38 = vector.broadcast %c0_i32_10 : i32 to vector<128x128xi32>
    %c32_i32_11 = arith.constant 32 : i32
    %39 = vector.broadcast %c32_i32_11 : i32 to vector<128x128xi32>
    %40 = arith.cmpi sge, %24, %39 : vector<128x128xi32>
    %41 = arith.extui %40 : vector<128x128xi1> to vector<128x128xi32>
    %42 = arith.addi %38, %41 : vector<128x128xi32>
    %c64_i32_12 = arith.constant 64 : i32
    %43 = vector.broadcast %c64_i32_12 : i32 to vector<128x128xi32>
    %44 = arith.cmpi sge, %24, %43 : vector<128x128xi32>
    %45 = arith.extui %44 : vector<128x128xi1> to vector<128x128xi32>
    %46 = arith.addi %42, %45 : vector<128x128xi32>
    %c96_i32_13 = arith.constant 96 : i32
    %47 = vector.broadcast %c96_i32_13 : i32 to vector<128x128xi32>
    %48 = arith.cmpi sge, %24, %47 : vector<128x128xi32>
    %49 = arith.extui %48 : vector<128x128xi1> to vector<128x128xi32>
    %50 = arith.addi %46, %49 : vector<128x128xi32>
    %51 = arith.cmpi eq, %37, %50 : vector<128x128xi32>
    %52 = arith.cmpi sle, %23, %24 : vector<128x128xi32>
    %53 = arith.andi %51, %52 : vector<128x128xi1>
    %54 = arith.extui %53 : vector<128x128xi1> to vector<128x128xi32>
    %55 = arith.sitofp %54 : vector<128x128xi32> to vector<128x128xf32>
    %cst_14 = arith.constant dense<0.000000e+00> : vector<8x128xf32>
    %56 = tpu.matmul %0, %55, %cst_14 {dimension_numbers = #tpu.dot_dimension_numbers<[1], [0], [0], [1], [0, 0, 1, 1], [], []>} : vector<8x128xf32>, vector<128x128xf32>, vector<8x128xf32> -> vector<8x128xf32>
    %cst_15 = arith.constant 5.000000e-01 : f32
    %57 = vector.broadcast %cst_15 : f32 to vector<8x128xf32>
    %58 = arith.cmpf oge, %56, %57 : vector<8x128xf32>
    %59 = arith.subf %56, %0 : vector<8x128xf32>
    %cst_16 = arith.constant 5.000000e-01 : f32
    %60 = vector.broadcast %cst_16 : f32 to vector<8x128xf32>
    %61 = arith.cmpf olt, %59, %60 : vector<8x128xf32>
    %62 = arith.andi %58, %61 : vector<8x128xi1>
    %c31_i32 = arith.constant 31 : i32
    %63 = vector.broadcast %c31_i32 : i32 to vector<8x128xi32>
    %64 = arith.cmpi eq, %22, %63 : vector<8x128xi32>
    %cst_17 = arith.constant 5.000000e-01 : f32
    %65 = vector.broadcast %cst_17 : f32 to vector<8x128xf32>
    %66 = arith.cmpf olt, %56, %65 : vector<8x128xf32>
    %67 = arith.andi %64, %66 : vector<8x128xi1>
    %68 = arith.ori %62, %67 : vector<8x128xi1>
    %69 = arith.extui %68 : vector<8x128xi1> to vector<8x128xi32>
    %70 = arith.sitofp %69 : vector<8x128xi32> to vector<8x128xf32>
    %71 = arith.mulf %5, %70 : vector<8x128xf32>
    %c0_i32_18 = arith.constant 0 : i32
    %72 = vector.broadcast %c0_i32_18 : i32 to vector<8x128xi32>
    %73 = arith.cmpi eq, %19, %72 : vector<8x128xi32>
    %cst_19 = arith.constant 0.000000e+00 : f32
    %74 = vector.broadcast %cst_19 : f32 to vector<8x128xf32>
    %75 = arith.select %73, %71, %74 : vector<8x128xi1>, vector<8x128xf32>
    %cst_20 = arith.constant dense<0.000000e+00> : vector<8xf32>
    %76 = vector.multi_reduction <add>, %75, %cst_20 [1] : vector<8x128xf32> to vector<8xf32>
    %77 = vector.shape_cast %76 : vector<8xf32> to vector<8x1xf32>
    %c0_21 = arith.constant 0 : index
    %c0_22 = arith.constant 0 : index
    %78 = vector.load %arg4[%c0_21, %c0_22] : memref<8x4xf32, #tpu.memory_space<vmem>>, vector<8x1xf32>
    tpu.vector_store %arg4[%c0_21, %c0_22], %77 {strides = array<i32>} : memref<8x4xf32, #tpu.memory_space<vmem>>, vector<8x1xf32>,
    %c1_i32 = arith.constant 1 : i32
    %79 = vector.broadcast %c1_i32 : i32 to vector<8x128xi32>
    %80 = arith.cmpi eq, %19, %79 : vector<8x128xi32>
    %cst_23 = arith.constant 0.000000e+00 : f32
    %81 = vector.broadcast %cst_23 : f32 to vector<8x128xf32>
    %82 = arith.select %80, %71, %81 : vector<8x128xi1>, vector<8x128xf32>
    %cst_24 = arith.constant dense<0.000000e+00> : vector<8xf32>
    %83 = vector.multi_reduction <add>, %82, %cst_24 [1] : vector<8x128xf32> to vector<8xf32>
    %84 = vector.shape_cast %83 : vector<8xf32> to vector<8x1xf32>
    %c0_25 = arith.constant 0 : index
    %c1 = arith.constant 1 : index
    %85 = vector.load %arg4[%c0_25, %c1] : memref<8x4xf32, #tpu.memory_space<vmem>>, vector<8x1xf32>
    tpu.vector_store %arg4[%c0_25, %c1], %84 {strides = array<i32>} : memref<8x4xf32, #tpu.memory_space<vmem>>, vector<8x1xf32>,
    %c2_i32 = arith.constant 2 : i32
    %86 = vector.broadcast %c2_i32 : i32 to vector<8x128xi32>
    %87 = arith.cmpi eq, %19, %86 : vector<8x128xi32>
    %cst_26 = arith.constant 0.000000e+00 : f32
    %88 = vector.broadcast %cst_26 : f32 to vector<8x128xf32>
    %89 = arith.select %87, %71, %88 : vector<8x128xi1>, vector<8x128xf32>
    %cst_27 = arith.constant dense<0.000000e+00> : vector<8xf32>
    %90 = vector.multi_reduction <add>, %89, %cst_27 [1] : vector<8x128xf32> to vector<8xf32>
    %91 = vector.shape_cast %90 : vector<8xf32> to vector<8x1xf32>
    %c0_28 = arith.constant 0 : index
    %c2 = arith.constant 2 : index
    %92 = vector.load %arg4[%c0_28, %c2] : memref<8x4xf32, #tpu.memory_space<vmem>>, vector<8x1xf32>
    tpu.vector_store %arg4[%c0_28, %c2], %91 {strides = array<i32>} : memref<8x4xf32, #tpu.memory_space<vmem>>, vector<8x1xf32>,
    %c3_i32 = arith.constant 3 : i32
    %93 = vector.broadcast %c3_i32 : i32 to vector<8x128xi32>
    %94 = arith.cmpi eq, %19, %93 : vector<8x128xi32>
    %cst_29 = arith.constant 0.000000e+00 : f32
    %95 = vector.broadcast %cst_29 : f32 to vector<8x128xf32>
    %96 = arith.select %94, %71, %95 : vector<8x128xi1>, vector<8x128xf32>
    %cst_30 = arith.constant dense<0.000000e+00> : vector<8xf32>
    %97 = vector.multi_reduction <add>, %96, %cst_30 [1] : vector<8x128xf32> to vector<8xf32>
    %98 = vector.shape_cast %97 : vector<8xf32> to vector<8x1xf32>
    %c0_31 = arith.constant 0 : index
    %c3 = arith.constant 3 : index
    %99 = vector.load %arg4[%c0_31, %c3] : memref<8x4xf32, #tpu.memory_space<vmem>>, vector<8x1xf32>
    tpu.vector_store %arg4[%c0_31, %c3], %98 {strides = array<i32>} : memref<8x4xf32, #tpu.memory_space<vmem>>, vector<8x1xf32>,
    return
  }
  func.func @transform_0(%arg0: i32) -> (i32, i32) {
    %c0_i32 = arith.constant 0 : i32
    %c0_i32_0 = arith.constant 0 : i32
    return %arg0, %c0_i32 : i32, i32
  }
  func.func @transform_1(%arg0: i32) -> (i32, i32) {
    %c0_i32 = arith.constant 0 : i32
    %c0_i32_0 = arith.constant 0 : i32
    return %arg0, %c0_i32 : i32, i32
  }
  func.func @transform_2(%arg0: i32) -> (i32, i32) {
    %c0_i32 = arith.constant 0 : i32
    %c0_i32_0 = arith.constant 0 : i32
    return %arg0, %c0_i32 : i32, i32
  }
  func.func @transform_3(%arg0: i32) -> (i32, i32) {
    %c0_i32 = arith.constant 0 : i32
    %c0_i32_0 = arith.constant 0 : i32
    return %arg0, %c0_i32 : i32, i32
  }
}

</mosaic_0001>

<bundles_post_ra>
// kernel: tpu_custom_call.1
= control target key start
LH: loop header
LB: loop body
LE: loop exit
PB: predicated region body
PF: predicated region fallthrough
CT: control target
= control target key end

     0   :  { %8 = vsyncpa [#allocation3], 0  ;;  %s1340_s0 = inlined_call_operand.hbm [shape: f32[32,128], index: 0, kind: input, shape index: {}]   ;;  %s1341_s1 = inlined_call_operand.hbm [shape: f32[32,128], index: 1, kind: input, shape index: {}]   ;;  %s1342_s2 = inlined_call_operand.hbm [shape: f32[32,128], index: 2, kind: input, shape index: {}]   ;;  %s1343_s3 = inlined_call_operand.vmem [shape: f32[32,4], index: 3, kind: output, shape index: {}]  }
   0x1   :  { %10 = vsyncpa [#allocation3 + $0x1], 0 }
   0x2   :  { %11 = vsyncpa [#allocation5], 0 }
   0x3   :  { %13 = vsyncpa [#allocation5 + $0x1], 0  ;;  %s1033_s12 = smov 0   ;;  %s1035_s13 = smov 0  }
   0x4   :  { %s1037_s14 = smov 0   ;;  %s1039_s15 = smov 0  }
   0x5 LB: > { %s1052_s16 = sadd.s32 4294967295, %s1004_s15   ;;  %s1055_s17 = sadd.s32 1, %s1004_s15   ;;  %s1004_s15 = sphi %s1039_s15, %s1356_s15   ;;  %s1000_s14 = sphi %s1037_s14, %s1355_s14   ;;  %s996_s13 = sphi %s1035_s13, %s1354_s13   ;;  %s992_s12 = sphi %s1033_s12, %s1353_s12  }
   0x6   : > { %s23_s18 = ssub.s32 %s1004_s15, %s1055_s17  ;;  %s26_s19 = sadd.s32 1, %s1000_s14 }
   0x7   : > { %p24_p0 = scmp.eq.s32.totalorder %s23_s18, 0  ;;  %p33_p1 = scmp.ne.s32.totalorder %s1000_s14, %s996_s13 }
   0x8   : > { %p34_p2 = scmp.eq.s32.totalorder %s1004_s15, 0  ;;  %p39_p3 = scmp.ne.s32.totalorder %s996_s13, %s992_s12 }
   0x9   : > { %s1065_s20 = scalar_select %p24_p0, %s1000_s14, %s26_s19  }
   0xa   : > { %p35_p4 = por %p34_p2, %p33_p1  ;;  %p40_p5 = scmp.eq.s32.totalorder %s1052_s16, 0 }
   0xb   : > { %p845_p6 = scmp.lt.s32.totalorder %s1004_s15, 4  ;;  %s141_s22 = sand.u32 1, %s1000_s14  }
   0xc   : > { %p1069_p7 = por %p40_p5, %p39_p3  ;;  %s1076_s23 = sshll.u32 %s141_s22, 3 }
   0xd   : > { %s1079_s24 = sshll.u32 %s1004_s15, 7  ;;  %p1081_p8 = pnand %p845_p6, %p35_p4 }
   0xe   : > { %s1345_s21 = scalar_select %p1069_p7, 1, 0 }
   0xf   : > { %s159_s26 = sand.u32 1, %s1004_s15   ;;  %s1090_s29 = scalar_lea.hbm %s1341_s1, %s1079_s24 }
  0x10   : > { %s163_s30 = scalar_lea.vmem [#allocation4], %s1076_s23  ;;  %s1095_s5 = scalar_lea.sflag [#allocation5], %s159_s26 }
  0x11   : > { %s170_s4 = sshll.u32 %s163_s30, 4  ;;  %s882_s6 = scalar_lea.hbm %s1090_s29, 128  ;;  %s171_s4 = int_to_ptr.vmem [resolvable:$true] %s170_s4 }
  0x12   : > { %p883_p11 = scmp.ne.s32.totalorder %s1090_s29, %s882_s6  ;;  %p1101_p12 = pneg %p1081_p8 }
  0x13   : > { %s887_s10 = scalar_lea.hbm %s1341_s1, 512  ;;  %p888_p1 = scmp.lt.s32.totalorder %s1090_s29, %s1341_s1 }
  0x14   : > { %p885_p13 = pnand %p1101_p12, %p883_p11  ;;  %p889_p2 = scmp.lt.s32.totalorder %s887_s10, %s882_s6 }
  0x16   : > { %p886_p0 = pneg %p885_p13  ;;  %p890_p3 = por %p889_p2, %p888_p1 }
  0x18   : > { %p891_p4 = pnand %p890_p3, %p886_p0 }
  0x1a   : > { %894 = shalt.err (!%p891_p4)
}
  0x1b   : > { %s895_s18 = scalar_lea.vmem %s171_s4, 128  ;;  %s1006_s19 = smov [#allocation4]  }
  0x1c   : > { %p896_p5 = scmp.ne.s32.totalorder %s171_s4, %s895_s18  ;;  %s900_s26 = sshll.u32 %s1006_s19, 4  ;;  %s901_s26 = int_to_ptr.vmem [resolvable:$false] %s900_s26 }
  0x1d   : > { %s902_s27 = scalar_lea.vmem %s901_s26, 256  ;;  %p903_p11 = scmp.lt.s32.totalorder %s171_s4, %s901_s26 }
  0x1e   : > { %p898_p6 = pnand %p896_p5, %p1101_p12  ;;  %p904_p13 = scmp.lt.s32.totalorder %s902_s27, %s895_s18 }
  0x20   : > { %p899_p9 = pneg %p898_p6  ;;  %p905_p10 = por %p904_p13, %p903_p11 }
  0x22   : > { %p906_p7 = pnand %p905_p10, %p899_p9 }
  0x24   : > { %909 = shalt.err (!%p906_p7)
}
  0x25   : > { %841 = dma.hbm_to_vmem [thread:$0]  (!%p1081_p8), %s1090_s29, 128, %s171_s4, %s1095_s5  }
  0x26   : > { %p1348_p0 = scmp.lt.s32.totalorder %s1004_s15, 5  ;;  %p1349_p1 = scmp.ge.s32.totalorder %s1004_s15, 1 }
  0x27   : > { %s1132_s8 = scalar_lea.hbm %s1340_s0, %s1079_s24  ;;  %s145_s9 = scalar_lea.vmem [#allocation2], %s1076_s23 }
  0x28   : > { %p1124_p2 = pnand %p1349_p1, %p1348_p0  ;;  %s152_s10 = sshll.u32 %s145_s9, 4  ;;  %s153_s10 = int_to_ptr.vmem [resolvable:$true] %s152_s10 }
  0x29   : > { %s1139_s29 = scalar_lea.hbm %s1342_s2, %s1079_s24  ;;  %s142_s15 = scalar_lea.sflag [#allocation3], %s141_s22 }
  0x2a   : > { %s1350_s28 = scalar_select %p1124_p2, 1, 0 }
  0x2b   : > { %s910_s4 = scalar_lea.hbm %s1132_s8, 128  ;;  %s915_s26 = scalar_lea.hbm %s1340_s0, 512 }
  0x2c   : > { %p911_p7 = scmp.ne.s32.totalorder %s1132_s8, %s910_s4  ;;  %p916_p3 = scmp.lt.s32.totalorder %s1132_s8, %s1340_s0 }
  0x2d   : > { %p917_p4 = scmp.lt.s32.totalorder %s915_s26, %s910_s4 }
  0x2e   : > { %p913_p9 = pnand %p911_p7, %p1101_p12 }
  0x2f   : > { %p918_p5 = por %p917_p4, %p916_p3 }
  0x30   : > { %p914_p10 = pneg %p913_p9 }
  0x32   : > { %p919_p6 = pnand %p918_p5, %p914_p10 }
  0x34   : > { %922 = shalt.err (!%p919_p6)
}
  0x35   : > { %s923_s24 = scalar_lea.vmem %s153_s10, 128  ;;  %s1007_s22 = smov [#allocation2]  }
  0x36   : > { %p924_p11 = scmp.ne.s32.totalorder %s153_s10, %s923_s24  ;;  %s928_s6 = sshll.u32 %s1007_s22, 4  ;;  %s929_s6 = int_to_ptr.vmem [resolvable:$false] %s928_s6 }
  0x37   : > { %s930_s9 = scalar_lea.vmem %s929_s6, 256  ;;  %p931_p1 = scmp.lt.s32.totalorder %s153_s10, %s929_s6 }
  0x38   : > { %p926_p13 = pnand %p924_p11, %p1101_p12  ;;  %p932_p7 = scmp.lt.s32.totalorder %s930_s9, %s923_s24 }
  0x3a   : > { %p927_p0 = pneg %p926_p13  ;;  %p933_p9 = por %p932_p7, %p931_p1 }
  0x3c   : > { %p934_p2 = pnand %p933_p9, %p927_p0 }
  0x3e   : > { %937 = shalt.err (!%p934_p2)
}
  0x3f   : > { %838 = dma.hbm_to_vmem [thread:$0]  (!%p1081_p8), %s1132_s8, 128, %s153_s10, %s142_s15  }
  0x40   : > { %s181_s11 = scalar_lea.vmem [#allocation6], %s1076_s23  ;;  %s938_s4 = scalar_lea.hbm %s1139_s29, 128 }
  0x41   : > { %s188_s12 = sshll.u32 %s181_s11, 4  ;;  %p939_p10 = scmp.ne.s32.totalorder %s1139_s29, %s938_s4  ;;  %s189_s12 = int_to_ptr.vmem [resolvable:$true] %s188_s12 }
  0x42   : > { %s943_s26 = scalar_lea.hbm %s1342_s2, 512  ;;  %p944_p2 = scmp.lt.s32.totalorder %s1139_s29, %s1342_s2 }
  0x43   : > { %p941_p3 = pnand %p939_p10, %p1101_p12  ;;  %p945_p5 = scmp.lt.s32.totalorder %s943_s26, %s938_s4 }
  0x45   : > { %p942_p4 = pneg %p941_p3  ;;  %p946_p6 = por %p945_p5, %p944_p2 }
  0x47   : > { %p947_p11 = pnand %p946_p6, %p942_p4 }
  0x49   : > { %950 = shalt.err (!%p947_p11)
}
  0x4a   : > { %s951_s23 = scalar_lea.vmem %s189_s12, 128  ;;  %s1008_s8 = smov [#allocation6]  }
  0x4b   : > { %p952_p13 = scmp.ne.s32.totalorder %s189_s12, %s951_s23  ;;  %s956_s10 = sshll.u32 %s1008_s8, 4  ;;  %s957_s10 = int_to_ptr.vmem [resolvable:$false] %s956_s10 }
  0x4c   : > { %s958_s15 = scalar_lea.vmem %s957_s10, 256  ;;  %p959_p7 = scmp.lt.s32.totalorder %s189_s12, %s957_s10 }
  0x4d   : > { %p954_p0 = pnand %p952_p13, %p1101_p12  ;;  %p960_p9 = scmp.lt.s32.totalorder %s958_s15, %s951_s23 }
  0x4f   : > { %p955_p1 = pneg %p954_p0  ;;  %p961_p10 = por %p960_p9, %p959_p7 }
  0x51   : > { %p962_p3 = pnand %p961_p10, %p955_p1 }
  0x53   : > { %965 = shalt.err (!%p962_p3)
}
  0x54   : > { %844 = dma.hbm_to_vmem [thread:$0]  (!%p1081_p8), %s1139_s29, 128, %s189_s12, %s1095_s5  }
  0x55   : > { %p1351_p4 = scmp.ne.s32.totalorder %s1350_s28, 0 }
  0x56   : > { %s199_s7 = sand.u32 (!%p1351_p4), 1, %s996_s13   ;;  %p1352_p12 = scmp.ne.s32.totalorder (!%p1351_p4), %s1345_s21, 0 }
  0x57   : > { %197 = sbr.rel (%p1351_p4) target bundleno = 484 (0x1e4), region = 32  ;;  %s1180_s24 = sshll.u32 (!%p1351_p4), %s199_s7, 3 }
  0x58   : > { %s200_s22 = scalar_lea.sflag (!%p1351_p4), [#allocation3], %s199_s7  ;;  %s203_s6 = scalar_lea.vmem (!%p1351_p4), [#allocation2], %s1180_s24 }
  0x5c   : > { %983 = dma.done.wait (%p1352_p12), %s200_s22, 128  }
  0x5d   : > { %985 = vsyncadd (%p1352_p12), %s200_s22, 4294967168  ;;  %s208_s25 = sand.u32 1, %s1052_s16   ;;  %s212_s28 = scalar_lea.vmem [#allocation4], %s1180_s24  ;;  %v262_v0 = vlaneseq }
  0x5e   : > { %s209_s5 = scalar_lea.sflag [#allocation5], %s208_s25 }
  0x5f   : > { %987 = dma.done.wait (%p1352_p12), %s209_s5, 256  }
  0x60   : > { %989 = vsyncadd (%p1352_p12), %s209_s5, 4294967040  ;;  %v1009_v1 = vmov 0.0   ;;  %v1194_v2 = vand.u32 127, %v262_v0  ;;  %v1196_v3 = vshrl.u32 %v262_v0, 7  ;;  %vm1010_vm0 = vmmov 0   ;;  %v257_v28 = vld [vmem:[%s203_s6] sm:$0xff] }
  0x61   : > { %794 = vmatprep.subr.mxu0 %v1009_v1  ;;  %826 = vmatprep.mubr.msk.f32.mxu0 %vm1010_vm0, %v1009_v1  ;;  %v1011_v5 = vmov 0   ;;  %v1012_v15 = vmov 1.0   ;;  %v258_v29 = vld [vmem:[%s212_s28] sm:$0xff]  ;;  %s221_s21 = scalar_lea.vmem [#allocation6], %s1180_s24  ;;  %p253_p8 = scmp.lt.s32.totalorder %s1052_s16, 3 }
  0x62   : > { %vm264_vm1 = vcmp.ge.s32.totalorder %v1194_v2, 32  ;;  %vm266_vm2 = vcmp.ge.s32.totalorder %v1194_v2, 64  ;;  %vm269_vm3 = vcmp.ge.s32.totalorder %v1194_v2, 96  ;;  %v290_v4 = vadd.s32 120, %v1196_v3  ;;  %v259_v30 = vld [vmem:[%s221_s21] sm:$0xff] }
  0x63   : > { %v265_v6 = vsel %vm264_vm1, 1, %v1011_v5  ;;  %v267_v7 = vsel %vm266_vm2, 1, %v1011_v5  ;;  %v270_v8 = vsel %vm269_vm3, 1, %v1011_v5  ;;  %v289_v9 = vadd.s32 112, %v1196_v3  ;;  %s1358_s16 = smov (!%p253_p8, %s1052_s16), 3 }
  0x64   : > { %v268_v10 = vadd.s32 %v267_v7, %v265_v6  ;;  %v288_v11 = vadd.s32 104, %v1196_v3  ;;  %vm450_vm4 = vcmp.le.s32.totalorder %v290_v4, %v1194_v2  ;;  %v287_v13 = vadd.s32 96, %v1196_v3  ;;  %s725_s29 = sshll.u32 %s1358_s16, 3 }
  0x65   : > { %vm449_vm5 = vcmp.le.s32.totalorder %v289_v9, %v1194_v2  ;;  %v286_v14 = vadd.s32 88, %v1196_v3  ;;  %v285_v16 = vadd.s32 80, %v1196_v3  ;;  %v284_v17 = vadd.s32 72, %v1196_v3  ;;  %s256_s12 = scalar_lea.vmem %s1343_s3, %s725_s29 }
  0x66   : > { %v1205_v12 = vadd.s32 %v270_v8, %v268_v10  ;;  %vm448_vm7 = vcmp.le.s32.totalorder %v288_v11, %v1194_v2  ;;  %vm447_vm10 = vcmp.le.s32.totalorder %v287_v13, %v1194_v2  ;;  %v283_v19 = vadd.s32 64, %v1196_v3 }
  0x67   : > { %vm446_vm13 = vcmp.le.s32.totalorder %v286_v14, %v1194_v2  ;;  %vm445_vm15 = vcmp.le.s32.totalorder %v285_v16, %v1194_v2  ;;  %vm444_vm1 = vcmp.le.s32.totalorder %v284_v17, %v1194_v2  ;;  %v282_v21 = vadd.s32 56, %v1196_v3 }
  0x68   : > { %vm738_vm6 = vcmp.eq.s32.totalorder %v1205_v12, 3  ;;  %vm734_vm12 = vcmp.eq.s32.totalorder %v1205_v12, 2  ;;  %v272_v18 = vmul.u32 32, %v1205_v12  ;;  %vm443_vm3 = vcmp.le.s32.totalorder %v283_v19, %v1194_v2 }
  0x69   : > { %vm466_vm8 = vmand %vm738_vm6, %vm450_vm4  ;;  %v281_v22 = vadd.s32 48, %v1196_v3  ;;  %v280_v23 = vadd.s32 40, %v1196_v3  ;;  %v279_v24 = vadd.s32 32, %v1196_v3  ;;  %v278_v25 = vadd.s32 24, %v1196_v3 }
  0x6a   : > { %795 = vmatpush3.msk.msra.mxu0 %vm466_vm8, %v1012_v15  ;;  %vm465_vm9 = vmand %vm738_vm6, %vm449_vm5  ;;  %v1238_v20 = vsub.s32 %v1194_v2, %v272_v18  ;;  %vm730_vm5 = vcmp.eq.s32.totalorder %v1205_v12, 1  ;;  %v277_v26 = vadd.s32 16, %v1196_v3  ;;  %v276_v27 = vadd.s32 8, %v1196_v3 }
  0x6b   : > { %796 = vmatprep.subr.mxu0 %v1009_v1  ;;  %vm464_vm11 = vmand %vm738_vm6, %vm448_vm7  ;;  %vm442_vm7 = vcmp.le.s32.totalorder %v282_v21, %v1194_v2  ;;  %v260_v31 = vadd.f32 %v259_v30, %v258_v29 }
  0x6c   : > { %797 = vmatpush3.msk.msra.mxu0 %vm465_vm9, %v1012_v15  ;;  %vm463_vm14 = vmand %vm738_vm6, %vm447_vm10  ;;  %vm441_vm9 = vcmp.le.s32.totalorder %v281_v22, %v1194_v2 }
  0x6d   : > { %798 = vmatprep.subr.mxu0 %v1009_v1  ;;  %vm462_vm0 = vmand %vm734_vm12, %vm446_vm13  ;;  %v261_v35 = vmul.f32 0.5, %v260_v31 }
  0x6e   : > { %799 = vmatpush3.msk.msra.mxu0 %vm464_vm11, %v1012_v15  ;;  %vm461_vm2 = vmand %vm734_vm12, %vm445_vm15  ;;  %vm440_vm11 = vcmp.le.s32.totalorder %v280_v23, %v1194_v2 }
  0x6f   : > { %800 = vmatprep.subr.mxu0 %v1009_v1  ;;  %vm460_vm4 = vmand %vm734_vm12, %vm444_vm1  ;;  %vm438_vm1 = vcmp.le.s32.totalorder %v278_v25, %v1194_v2 }
  0x70   : > { %801 = vmatpush3.msk.msra.mxu0 %vm463_vm14, %v1012_v15  ;;  %vm459_vm8 = vmand %vm734_vm12, %vm443_vm3  ;;  %vm439_vm14 = vcmp.le.s32.totalorder %v279_v24, %v1194_v2  ;;  %vm437_vm3 = vcmp.le.s32.totalorder %v277_v26, %v1194_v2 }
  0x71   : > { %802 = vmatprep.subr.mxu0 %v1009_v1  ;;  %vm458_vm10 = vmand %vm730_vm5, %vm442_vm7  ;;  %vm436_vm7 = vcmp.le.s32.totalorder %v276_v27, %v1194_v2 }
  0x72   : > { %803 = vmatpush3.msk.msra.mxu0 %vm462_vm0, %v1012_v15  ;;  %vm457_vm13 = vmand %vm730_vm5, %vm441_vm9  ;;  %vm726_vm0 = vcmp.eq.s32.totalorder %v1205_v12, 0  ;;  %vm435_vm9 = vcmp.le.s32.totalorder %v1196_v3, %v1194_v2 }
  0x73   : > { %804 = vmatprep.subr.mxu0 %v1009_v1  ;;  %vm456_vm15 = vmand %vm730_vm5, %vm440_vm11 }
  0x74   : > { %805 = vmatpush3.msk.msra.mxu0 %vm461_vm2, %v1012_v15  ;;  %vm455_vm2 = vmand %vm730_vm5, %vm439_vm14 }
  0x75   : > { %806 = vmatprep.subr.mxu0 %v1009_v1  ;;  %vm451_vm11 = vmand %vm726_vm0, %vm435_vm9 }
  0x76   : > { %807 = vmatpush3.msk.msra.mxu0 %vm460_vm4, %v1012_v15  ;;  %vm454_vm4 = vmand %vm726_vm0, %vm438_vm1 }
  0x77   : > { %808 = vmatprep.subr.mxu0 %v1009_v1 }
  0x78   : > { %809 = vmatpush3.msk.msra.mxu0 %vm459_vm8, %v1012_v15  ;;  %vm453_vm8 = vmand %vm726_vm0, %vm437_vm3 }
  0x79   : > { %810 = vmatprep.subr.mxu0 %v1009_v1 }
  0x7a   : > { %811 = vmatpush3.msk.msra.mxu0 %vm458_vm10, %v1012_v15  ;;  %vm452_vm10 = vmand %vm726_vm0, %vm436_vm7  ;;  %vm596_vm7 = vcmask 23568  }
  0x7b   : > { %812 = vmatprep.subr.mxu0 %v1009_v1 }
  0x7c   : > { %813 = vmatpush3.msk.msra.mxu0 %vm457_vm13, %v1012_v15  ;;  %vm573_vm13 = vcmp.eq.s32.totalorder %v1238_v20, 31 }
  0x7d   : > { %814 = vmatprep.subr.mxu0 %v1009_v1 }
  0x7e   : > { %815 = vmatpush3.msk.msra.mxu0 %vm456_vm15, %v1012_v15 }
  0x7f   : > { %816 = vmatprep.subr.mxu0 %v1009_v1 }
  0x80   : > { %817 = vmatpush3.msk.msra.mxu0 %vm455_vm2, %v1012_v15 }
  0x81   : > { %818 = vmatprep.subr.mxu0 %v1009_v1 }
  0x82   : > { %819 = vmatpush3.msk.msra.mxu0 %vm454_vm4, %v1012_v15 }
  0x83   : > { %820 = vmatprep.subr.mxu0 %v1009_v1 }
  0x84   : > { %821 = vmatpush3.msk.msra.mxu0 %vm453_vm8, %v1012_v15  ;;  %vm602_vm8 = vcmask 31768  }
  0x85   : > { %822 = vmatprep.subr.mxu0 %v1009_v1 }
  0x86   : > { %823 = vmatpush3.msk.msra.mxu0 %vm452_vm10, %v1012_v15 }
  0x87   : > { %824 = vmatprep.subr.mxu0 %v1009_v1 }
  0x88   : > { %825 = vmatpush3.msk.msra.mxu0 %vm451_vm11, %v1012_v15 }
  0x89   : > { %827 = vmatmul.mubr.f32.vlgmr.msra.gmra.mxu0 %v257_v28 }
 0x149   : > { %v565_v32 = vpop.f32.mrf.mxu0 }
 0x14a   : > { %v570_v33 = vsub.f32 %v565_v32, %v257_v28  ;;  %vm574_vm14 = vcmp.lt.f32.partialorder %v565_v32, 0.5  ;;  %vm569_vm15 = vcmp.ge.f32.partialorder %v565_v32, 0.5 }
 0x14b   : > { %v828_v34 = vpop.f32.mrf.mxu0  ;;  %vm575_vm2 = vmand %vm573_vm13, %vm574_vm14 }
 0x14c   : > { %vm571_vm1 = vcmp.lt.f32.partialorder %v570_v33, 0.5 }
 0x14d   : > { %vm572_vm3 = vmand %vm569_vm15, %vm571_vm1 }
 0x14e   : > { %vm576_vm4 = vmor %vm572_vm3, %vm575_vm2 }
 0x14f   : > { %v774_v36 = vsel %vm576_vm4, 1.0, %v1009_v1 }
 0x150   : > { %v579_v37 = vmul.f32 %v774_v36, %v261_v35 }
 0x152   : > { %v593_v38 = vsel %vm734_vm12, %v579_v37, 0.0  ;;  %v581_v39 = vsel %vm726_vm0, %v579_v37, 0.0  ;;  %v599_v40 = vsel %vm738_vm6, %v579_v37, 0.0  ;;  %v587_v41 = vsel %vm730_vm5, %v579_v37, 0.0 }
 0x153   : > { %594 = vadd.xlane.f32.xlu1 %v593_v38  ;;  %582 = vadd.xlane.f32.xlu0 %v581_v39  ;;  %vm584_vm12 = vcmask 7168   ;;  %vm590_vm0 = vcmask 15368  }
 0x157   : > { %600 = vadd.xlane.f32.xlu1 %v599_v40  ;;  %588 = vadd.xlane.f32.xlu0 %v587_v41 }
 0x1dc   : > { %v595_v42 = vpop.xlane.xlu1 %594  ;;  %v583_v43 = vpop.xlane.xlu0 %582 }
 0x1dd   : > { %585 = vst.msk [vmem:[%s256_s12] sm:$0xff] %vm584_vm12, %v583_v43 }
 0x1e0   : > { %v589_v44 = vpop.xlane.xlu0 %588  ;;  %v601_v45 = vpop.xlane.xlu1 %600 }
 0x1e1   : > { %591 = vst.msk [vmem:[%s256_s12] sm:$0xff] %vm590_vm0, %v589_v44 }
 0x1e2   : > { %597 = vst.msk [vmem:[%s256_s12] sm:$0xff] %vm596_vm7, %v595_v42 }
 0x1e3   : > { %603 = vst.msk [vmem:[%s256_s12] sm:$0xff] %vm602_vm8, %v601_v45 }
 0x1e4 PF: > { %p16_p2 = scmp.ge.s32.totalorder %s1055_s17, 6   ;;  %s1353_s12 = smov %s996_s13 }
 0x1e5   : > { %s1354_s13 = smov %s1000_s14  ;;  %s1355_s14 = smov %s1065_s20 }
 0x1e6   : > { %s1356_s15 = smov %s1055_s17  ;;  %18 = sbr.rel (!%p16_p2) target bundleno = 5 (0x5), region = 96 }
 0x1eb   :  { %623 = vsyncpa [#allocation3], 1 }
 0x1ec   :  { %625 = vsyncpa [#allocation3 + $0x1], 1 }
 0x1ed   :  { %626 = vsyncpa [#allocation5], 1 }
 0x1ee   :  { %628 = vsyncpa [#allocation5 + $0x1], 1 }

</bundles_post_ra>
